<compile_context>
chip_gen: v7x
topology: tpu7x:2x2x1
jax: 0.10.0
libtpu: 0.0.40
codegen_flags: <defaults>
</compile_context>

<pallas_src>
import functools

import jax
import jax.numpy as jnp
from jax.experimental import pallas as pl
from jax.experimental.pallas import tpu as pltpu

IN_FEATURES = 32 * 32   # 1024
HIDDEN = 100
OUT = 10

HIDDEN_PAD = 128        # lane-dense hidden width (native MXU width on v5e)
OUT_PAD = 128           # lane-dense output width
NEG_FILL = -1e30        # mask value for padded logit columns

DEFAULT_TB = 1024       # batch tile (rows); multiple of 16 for bf16 packing


def _round_up(n, m):
    return ((n + m - 1) // m) * m


def mlp_kernel(x_ref, w1_ref, b1_ref, w2_ref, b2_ref, o_ref):
    """Fused MLP tile: fc1 -> relu -> (dropout=id) -> fc3 -> log_softmax.

    x_ref : (TB, 1024)      f32 (cast to bf16 in-register for the MXU)
    w1_ref: (1024, 128)     bf16   b1_ref: (1, 128) f32
    w2_ref: (128, 128)      bf16   b2_ref: (1, 128) f32 (padded cols = -1e30)
    o_ref : (TB, 128)       bf16   (log-probs in cols [:10], junk elsewhere)
    """
    # fc1 + relu: bf16 MXU operands, f32 accumulation; elementwise stays f32.
    x_bf16 = x_ref[...].astype(jnp.bfloat16)
    h = jnp.dot(x_bf16, w1_ref[...],
                preferred_element_type=jnp.float32) + b1_ref[...]
    h = jnp.maximum(h, 0.0)

    # TODO(synk): Dropout(0.2) is identity in eval mode; training-mode dropout
    # (pltpu.prng_random_bits mask + 1/(1-p) scale) intentionally not applied.

    # fc3: bf16 MXU operands, f32 accumulation. Padded b2 columns carry -1e30,
    # so padded logits contribute exp(-inf)=0 to the softmax denominator.
    logits = jnp.dot(h.astype(jnp.bfloat16), w2_ref[...],
                     preferred_element_type=jnp.float32) + b2_ref[...]

    # Numerically-stable log_softmax over dim=1 (f32), then bf16 store.
    m = jnp.max(logits, axis=-1, keepdims=True)
    shifted = logits - m
    lse = jnp.log(jnp.sum(jnp.exp(shifted), axis=-1, keepdims=True))
    o_ref[...] = (shifted - lse).astype(o_ref.dtype)


def prepare_params(w1, b1, w2, b2):
    """One-time prep: PyTorch (out, in) weights -> padded (in, out_pad) bf16.

    w1: (100, 1024)  b1: (100,)   w2: (10, 100)  b2: (10,)
    """
    w1_p = jnp.zeros((IN_FEATURES, HIDDEN_PAD), jnp.float32)
    w1_p = w1_p.at[:, :HIDDEN].set(w1.T)
    b1_p = jnp.zeros((1, HIDDEN_PAD), jnp.float32).at[0, :HIDDEN].set(b1)

    w2_p = jnp.zeros((HIDDEN_PAD, OUT_PAD), jnp.float32)
    w2_p = w2_p.at[:HIDDEN, :OUT].set(w2.T)
    # Padded output columns get a huge negative bias -> masked in log_softmax.
    b2_p = jnp.full((1, OUT_PAD), NEG_FILL, jnp.float32).at[0, :OUT].set(b2)

    # TODO(synk): optional int8 (v5e) / fp8 (v7x) quantization of x and W1
    # would halve the dominant HBM stream; bf16 kept as the portable default.
    return (w1_p.astype(jnp.bfloat16), b1_p,
            w2_p.astype(jnp.bfloat16), b2_p)


def _choose_tb(batch, tb):
    """Pick a batch tile: multiple of 16, >= 2 grid steps whenever possible."""
    if batch <= 2 * tb:
        # Split mid-size batches in two so ("parallel",) can use both v7x TCs.
        return max(16, _round_up(-(-batch // 2), 16))
    return tb


@functools.partial(jax.jit, static_argnames=("tb",))
def net_forward(x_nchw, w1_p, b1_p, w2_p, b2_p, *, tb=DEFAULT_TB):
    """x_nchw: (B, 1, 32, 32) float32 -> (B, 10) f32 log-probs."""
    B = x_nchw.shape[0]
    x2d = x_nchw.reshape(B, IN_FEATURES)        # == torch x.view(-1, 32*32)

    tb_eff = _choose_tb(B, tb)
    grid = (pl.cdiv(B, tb_eff),)                # partial last block is fine

    flops = 2 * B * (IN_FEATURES * HIDDEN_PAD + HIDDEN_PAD * OUT_PAD)
    bytes_accessed = (
        B * IN_FEATURES * 4                     # x read (f32)
        + (IN_FEATURES * HIDDEN_PAD + HIDDEN_PAD * OUT_PAD) * 2  # bf16 weights
        + 2 * OUT_PAD * 4                       # biases
        + B * OUT_PAD * 2                       # bf16 output write
    )

    out_padded = pl.pallas_call(
        mlp_kernel,
        out_shape=jax.ShapeDtypeStruct((B, OUT_PAD), jnp.bfloat16),
        grid=grid,
        in_specs=[
            # x: streamed per batch tile (double-buffered by Pallas)
            pl.BlockSpec((tb_eff, IN_FEATURES), lambda i: (i, 0)),
            # weights/biases: constant index_map -> resident across the grid
            pl.BlockSpec((IN_FEATURES, HIDDEN_PAD), lambda i: (0, 0)),
            pl.BlockSpec((1, HIDDEN_PAD), lambda i: (0, 0)),
            pl.BlockSpec((HIDDEN_PAD, OUT_PAD), lambda i: (0, 0)),
            pl.BlockSpec((1, OUT_PAD), lambda i: (0, 0)),
        ],
        out_specs=pl.BlockSpec((tb_eff, OUT_PAD), lambda i: (i, 0)),
        compiler_params=pltpu.CompilerParams(
            # independent batch tiles -> shard across TensorCores (v7x megacore)
            dimension_semantics=("parallel",),
        ),
        cost_estimate=pl.CostEstimate(
            flops=flops,
            transcendentals=B * OUT_PAD,        # exp count
            bytes_accessed=bytes_accessed,
        ),
    )(x2d, w1_p, b1_p, w2_p, b2_p)

    # Drop the 118 padded logit lanes; return f32 for downstream consumers.
    return out_padded[:, :OUT].astype(jnp.float32)


def init_params(key):
    """Deterministic init mimicking nn.Linear default (uniform +/- 1/sqrt(fan_in))."""
    k1, k2, k3, k4 = jax.random.split(key, 4)
    bound1 = 1.0 / jnp.sqrt(IN_FEATURES)
    bound2 = 1.0 / jnp.sqrt(HIDDEN)
    w1 = jax.random.uniform(k1, (HIDDEN, IN_FEATURES), jnp.float32, -bound1, bound1)
    b1 = jax.random.uniform(k2, (HIDDEN,), jnp.float32, -bound1, bound1)
    w2 = jax.random.uniform(k3, (OUT, HIDDEN), jnp.float32, -bound2, bound2)
    b2 = jax.random.uniform(k4, (OUT,), jnp.float32, -bound2, bound2)
    return w1, b1, w2, b2


if __name__ == "__main__":
    key = jax.random.PRNGKey(0)
    k_x, k_p = jax.random.split(key)

    B = 2
    x = jax.random.normal(k_x, (B, 1, 32, 32), dtype=jnp.float32)  # NCHW, like MNIST
    w1, b1, w2, b2 = init_params(k_p)

    # One-time parameter preparation (transpose + pad + bf16 cast).
    params = prepare_params(w1, b1, w2, b2)

    out = net_forward(x, *params)
    out = jax.block_until_ready(out)

    # sanity: log_softmax rows must sum (in prob space) to ~1 (bf16 storage
    # of the log-probs gives ~0.2-0.5% row-sum deviation).
    probs_sum = jnp.sum(jnp.exp(out), axis=1)
    assert out.shape == (B, OUT)
    assert bool(jnp.all(jnp.abs(probs_sum - 1.0) < 2e-2))
    assert bool(jnp.all(jnp.isfinite(out)))

    print("KERNEL_OK")
</pallas_src>

<mosaic_0001>
module attributes {stable_mosaic.version = 11 : i64} {
  func.func @mlp_kernel(%arg0: i32, %arg1: memref<16x1024xf32, #tpu.memory_space<vmem>>, %arg2: memref<1024x128xbf16, #tpu.memory_space<vmem>>, %arg3: memref<1x128xf32, #tpu.memory_space<vmem>>, %arg4: memref<128x128xbf16, #tpu.memory_space<vmem>>, %arg5: memref<1x128xf32, #tpu.memory_space<vmem>>, %arg6: memref<16x128xbf16, #tpu.memory_space<vmem>>) attributes {dimension_semantics = [#tpu.dimension_semantics<parallel>], iteration_bounds = array<i64: 1>, scalar_prefetch = 0 : i64, scratch_operands = 0 : i64, tpu.core_type = #tpu.core_type<tc>, window_params = [{transform_indices = @transform_0, window_bounds = array<i64: 16, 1024>}, {pipeline_mode = #tpu.pipeline_mode<synchronous>, transform_indices = @transform_1, window_bounds = array<i64: 1024, 128>}, {pipeline_mode = #tpu.pipeline_mode<synchronous>, transform_indices = @transform_2, window_bounds = array<i64: 1, 128>}, {pipeline_mode = #tpu.pipeline_mode<synchronous>, transform_indices = @transform_3, window_bounds = array<i64: 128, 128>}, {pipeline_mode = #tpu.pipeline_mode<synchronous>, transform_indices = @transform_4, window_bounds = array<i64: 1, 128>}, {transform_indices = @transform_5, window_bounds = array<i64: 16, 128>}]} {
    %c0 = arith.constant 0 : index
    %c0_0 = arith.constant 0 : index
    %0 = vector.load %arg1[%c0, %c0_0] : memref<16x1024xf32, #tpu.memory_space<vmem>>, vector<16x1024xf32>
    %1 = arith.truncf %0 : vector<16x1024xf32> to vector<16x1024xbf16>
    %c0_1 = arith.constant 0 : index
    %c0_2 = arith.constant 0 : index
    %2 = vector.load %arg2[%c0_1, %c0_2] : memref<1024x128xbf16, #tpu.memory_space<vmem>>, vector<1024x128xbf16>
    %cst = arith.constant dense<0.000000e+00> : vector<16x128xf32>
    %3 = tpu.matmul %1, %2, %cst {dimension_numbers = #tpu.dot_dimension_numbers<[1], [0], [0], [1], [0, 0, 1, 1], [], []>} : vector<16x1024xbf16>, vector<1024x128xbf16>, vector<16x128xf32> -> vector<16x128xf32>
    %c0_3 = arith.constant 0 : index
    %c0_4 = arith.constant 0 : index
    %4 = vector.load %arg3[%c0_3, %c0_4] : memref<1x128xf32, #tpu.memory_space<vmem>>, vector<1x128xf32>
    %5 = vector.broadcast %4 : vector<1x128xf32> to vector<16x128xf32>
    %6 = arith.addf %3, %5 : vector<16x128xf32>
    %cst_5 = arith.constant 0.000000e+00 : f32
    %7 = vector.broadcast %cst_5 : f32 to vector<16x128xf32>
    %8 = arith.maximumf %6, %7 : vector<16x128xf32>
    %9 = arith.truncf %8 : vector<16x128xf32> to vector<16x128xbf16>
    %c0_6 = arith.constant 0 : index
    %c0_7 = arith.constant 0 : index
    %10 = vector.load %arg4[%c0_6, %c0_7] : memref<128x128xbf16, #tpu.memory_space<vmem>>, vector<128x128xbf16>
    %cst_8 = arith.constant dense<0.000000e+00> : vector<16x128xf32>
    %11 = tpu.matmul %9, %10, %cst_8 {dimension_numbers = #tpu.dot_dimension_numbers<[1], [0], [0], [1], [0, 0, 1, 1], [], []>} : vector<16x128xbf16>, vector<128x128xbf16>, vector<16x128xf32> -> vector<16x128xf32>
    %c0_9 = arith.constant 0 : index
    %c0_10 = arith.constant 0 : index
    %12 = vector.load %arg5[%c0_9, %c0_10] : memref<1x128xf32, #tpu.memory_space<vmem>>, vector<1x128xf32>
    %13 = vector.broadcast %12 : vector<1x128xf32> to vector<16x128xf32>
    %14 = arith.addf %11, %13 : vector<16x128xf32>
    %cst_11 = arith.constant dense<0xFF800000> : vector<16xf32>
    %15 = vector.multi_reduction <maximumf>, %14, %cst_11 [1] : vector<16x128xf32> to vector<16xf32>
    %16 = vector.shape_cast %15 : vector<16xf32> to vector<16x1xf32>
    %17 = vector.broadcast %16 : vector<16x1xf32> to vector<16x128xf32>
    %18 = arith.subf %14, %17 : vector<16x128xf32>
    %19 = math.exp %18 : vector<16x128xf32>
    %cst_12 = arith.constant dense<0.000000e+00> : vector<16xf32>
    %20 = vector.multi_reduction <add>, %19, %cst_12 [1] : vector<16x128xf32> to vector<16xf32>
    %21 = vector.shape_cast %20 : vector<16xf32> to vector<16x1xf32>
    %22 = math.log %21 : vector<16x1xf32>
    %23 = vector.broadcast %22 : vector<16x1xf32> to vector<16x128xf32>
    %24 = arith.subf %18, %23 : vector<16x128xf32>
    %25 = arith.truncf %24 : vector<16x128xf32> to vector<16x128xbf16>
    %c0_13 = arith.constant 0 : index
    %c0_14 = arith.constant 0 : index
    %26 = vector.load %arg6[%c0_13, %c0_14] : memref<16x128xbf16, #tpu.memory_space<vmem>>, vector<16x128xbf16>
    tpu.vector_store %arg6[%c0_13, %c0_14], %25 {strides = array<i32>} : memref<16x128xbf16, #tpu.memory_space<vmem>>, vector<16x128xbf16>,
    return
  }
  func.func @transform_0(%arg0: i32) -> (i32, i32) {
    %c0_i32 = arith.constant 0 : i32
    %c0_i32_0 = arith.constant 0 : i32
    return %arg0, %c0_i32 : i32, i32
  }
  func.func @transform_1(%arg0: i32) -> (i32, i32) {
    %c0_i32 = arith.constant 0 : i32
    %c0_i32_0 = arith.constant 0 : i32
    %c0_i32_1 = arith.constant 0 : i32
    return %c0_i32, %c0_i32_0 : i32, i32
  }
  func.func @transform_2(%arg0: i32) -> (i32, i32) {
    %c0_i32 = arith.constant 0 : i32
    %c0_i32_0 = arith.constant 0 : i32
    %c0_i32_1 = arith.constant 0 : i32
    return %c0_i32, %c0_i32_0 : i32, i32
  }
  func.func @transform_3(%arg0: i32) -> (i32, i32) {
    %c0_i32 = arith.constant 0 : i32
    %c0_i32_0 = arith.constant 0 : i32
    %c0_i32_1 = arith.constant 0 : i32
    return %c0_i32, %c0_i32_0 : i32, i32
  }
  func.func @transform_4(%arg0: i32) -> (i32, i32) {
    %c0_i32 = arith.constant 0 : i32
    %c0_i32_0 = arith.constant 0 : i32
    %c0_i32_1 = arith.constant 0 : i32
    return %c0_i32, %c0_i32_0 : i32, i32
  }
  func.func @transform_5(%arg0: i32) -> (i32, i32) {
    %c0_i32 = arith.constant 0 : i32
    %c0_i32_0 = arith.constant 0 : i32
    return %arg0, %c0_i32 : i32, i32
  }
}

</mosaic_0001>

<bundles_post_ra>
// kernel: net_forward.1
= control target key start
LH: loop header
LB: loop body
LE: loop exit
PB: predicated region body
PF: predicated region fallthrough
CT: control target
= control target key end

     0   :  { %10 = vsyncpa [#allocation3], 0  ;;  %s1491_s18 = smov [#allocation2]   ;;  %s1643_s0 = inlined_call_operand.vmem [shape: f32[2,1024], index: 0, kind: input, shape index: {}]   ;;  %s1644_s1 = inlined_call_operand.hbm [shape: bf16[1024,128], index: 1, kind: input, shape index: {}]   ;;  %s1645_s2 = inlined_call_operand.vmem [shape: f32[1,128], index: 2, kind: input, shape index: {}]   ;;  %s1646_s3 = inlined_call_operand.vmem [shape: bf16[128,128], index: 3, kind: input, shape index: {}]   ;;  %s1647_s4 = inlined_call_operand.vmem [shape: f32[1,128], index: 4, kind: input, shape index: {}]   ;;  %s1648_s5 = inlined_call_operand.vmem [shape: bf16[2,128], index: 5, kind: output, shape index: {}]  }
   0x1   :  { %s18_s19 = sshll.u32 %s1491_s18, 4  ;;  %s1467_s22 = scalar_lea.hbm %s1644_s1, 8192  ;;  %s19_s19 = int_to_ptr.vmem [resolvable:$true] %s18_s19 }
   0x2   :  { %p1468_p0 = scmp.ne.s32.totalorder %s1644_s1, %s1467_s22  ;;  %p1471_p1 = scmp.lt.u32.totalorder %s1467_s22, %s1644_s1 }
   0x4   :  { %p1473_p2 = pnand %p1471_p1, %p1468_p0 }
   0x6   :  { %1476 = shalt.err (!%p1473_p2)
}
   0x7   :  { %s1477_s27 = scalar_lea.vmem %s19_s19, 8192  ;;  %p1482_p4 = scmp.lt.s32.totalorder %s19_s19, %s19_s19 }
   0x8   :  { %p1478_p3 = scmp.ne.s32.totalorder %s19_s19, %s1477_s27  ;;  %p1483_p5 = scmp.lt.s32.totalorder %s1477_s27, %s1477_s27 }
   0xa   :  { %p1484_p6 = por %p1483_p5, %p1482_p4 }
   0xc   :  { %p1485_p7 = pnand %p1484_p6, %p1478_p3 }
   0xe   :  { %1488 = shalt.err (!%p1485_p7)
}
   0xf   :  { %s1492_s28 = smov 64   ;;  %s1493_s29 = smov 4  }
  0x10   :  { %24 = dma.hbm_to_vmem [thread:$0]  %s1644_s1, 8192, %s19_s19, [#allocation3], %s1492_s28, %s1492_s28, %s1493_s29  }
  0x11   :  { %1489 = dma.done.wait [#allocation3], 8192  }
  0x12   :  { %1490 = vsyncadd [#allocation3], 4294959104  ;;  %v1363_v0 = vld [vmem:[#allocation2 + $0x40] sm:$0xff]   ;;  %v1367_v4 = vld [vmem:[#allocation2 + $0x48] sm:$0xff]   ;;  %v1494_v25 = vmov 1983009808   ;;  %v74_v27 = vlaneseq }
  0x13   :  { %v1364_v1 = vld [vmem:[#allocation2 + $0xc0] sm:$0xff]   ;;  %1239 = vmatprep.subr.bf16.mxu0 %v1363_v0  ;;  %v1368_v5 = vld [vmem:[#allocation2 + $0xc8] sm:$0xff]   ;;  %v1371_v8 = vld [vmem:[#allocation2 + $0x50] sm:$0xff]   ;;  %v72_v26 = vunpack.c.l.s4 %v1494_v25  ;;  %vm1496_vm0 = vmmov 0  }
  0x14   :  { %v1365_v2 = vld [vmem:[#allocation2] sm:$0xff]   ;;  %1261 = vmatprep.subr.bf16.mxu1 %v1364_v1  ;;  %v1369_v6 = vld [vmem:[#allocation2 + $0x8] sm:$0xff]   ;;  %v1372_v9 = vld [vmem:[#allocation2 + $0xd0] sm:$0xff]   ;;  %v1540_v33 = vshrl.u32 %v74_v27, 7 }
  0x15   :  { %v1366_v3 = vld [vmem:[#allocation2 + $0x80] sm:$0xff]   ;;  %1240 = vmatpush3.bf16.msra.mxu0 %v1365_v2  ;;  %v1370_v7 = vld [vmem:[#allocation2 + $0x88] sm:$0xff]   ;;  %v1373_v10 = vld [vmem:[#allocation2 + $0x10] sm:$0xff]   ;;  %v73_v32 = vunpack.c.0.s8 %v72_v26 }
  0x16   :  { %1262 = vmatpush3.bf16.msra.mxu1 %v1366_v3  ;;  %1241 = vmatprep.subr.bf16.mxu0 %v1367_v4  ;;  %v1374_v11 = vld [vmem:[#allocation2 + $0x90] sm:$0xff]   ;;  %v1375_v12 = vld [vmem:[#allocation2 + $0x58] sm:$0xff]   ;;  %v1379_v16 = vld [vmem:[#allocation2 + $0x60] sm:$0xff]  }
  0x17   :  { %1263 = vmatprep.subr.bf16.mxu1 %v1368_v5  ;;  %v1376_v13 = vld [vmem:[#allocation2 + $0xd8] sm:$0xff]   ;;  %v1380_v17 = vld [vmem:[#allocation2 + $0xe0] sm:$0xff]   ;;  %v1383_v20 = vld [vmem:[#allocation2 + $0x68] sm:$0xff]   ;;  %v1543_v37 = vsub.s32 %v73_v32, %v1540_v33 }
  0x18   :  { %v1377_v14 = vld [vmem:[#allocation2 + $0x18] sm:$0xff]   ;;  %v1381_v18 = vld [vmem:[#allocation2 + $0x20] sm:$0xff]   ;;  %v1384_v21 = vld [vmem:[#allocation2 + $0xe8] sm:$0xff]  }
  0x19   :  { %1242 = vmatpush3.bf16.msra.mxu0 %v1369_v6  ;;  %v1378_v15 = vld [vmem:[#allocation2 + $0x98] sm:$0xff]   ;;  %v1382_v19 = vld [vmem:[#allocation2 + $0xa0] sm:$0xff]   ;;  %v1385_v22 = vld [vmem:[#allocation2 + $0x28] sm:$0xff]  }
  0x1a   :  { %1264 = vmatpush3.bf16.msra.mxu1 %v1370_v7  ;;  %1243 = vmatprep.subr.bf16.mxu0 %v1371_v8  ;;  %v1386_v23 = vld [vmem:[#allocation2 + $0xa8] sm:$0xff]   ;;  %v1387_v24 = vld [vmem:[#allocation2 + $0x70] sm:$0xff]   ;;  %v1391_v31 = vld [vmem:[#allocation2 + $0x78] sm:$0xff]  }
  0x1b   :  { %1265 = vmatprep.subr.bf16.mxu1 %v1372_v9  ;;  %v1388_v28 = vld [vmem:[#allocation2 + $0xf0] sm:$0xff]   ;;  %v1392_v34 = vld [vmem:[#allocation2 + $0xf8] sm:$0xff]   ;;  %v1407_v53 = vld [vmem:[#allocation2 + $0x140] sm:$0xff]  }
  0x1c   :  { %v1389_v29 = vld [vmem:[#allocation2 + $0x30] sm:$0xff]   ;;  %v1393_v35 = vld [vmem:[#allocation2 + $0x38] sm:$0xff]   ;;  %v1408_v58 = vld [vmem:[#allocation2 + $0x1c0] sm:$0xff]  }
  0x1d   :  { %1244 = vmatpush3.bf16.msra.mxu0 %v1373_v10  ;;  %v1390_v30 = vld [vmem:[#allocation2 + $0xb0] sm:$0xff]   ;;  %v1394_v36 = vld [vmem:[#allocation2 + $0xb8] sm:$0xff]   ;;  %v1409_v62 = vld [vmem:[#allocation2 + $0x100] sm:$0xff]  }
  0x1e   :  { %1266 = vmatpush3.bf16.msra.mxu1 %v1374_v11  ;;  %1245 = vmatprep.subr.bf16.mxu0 %v1375_v12  ;;  %v1395_v38 = vld [vmem:[%s1643_s0] ss:$16 sps:$4 sm:$0xff]   ;;  %v1403_v43 = vld [vmem:[%s1643_s0 + $0x4] ss:$16 sps:$4 sm:$0xff]   ;;  %v1411_v4 = vld [vmem:[#allocation2 + $0x148] sm:$0xff]  }
  0x1f   :  { %1267 = vmatprep.subr.bf16.mxu1 %v1376_v13  ;;  %v1397_v39 = vld [vmem:[%s1643_s0 + $0x20] ss:$16 sps:$4 sm:$0xff]   ;;  %v77_v42 = vrot.slane %v1395_v38, %v1543_v37  ;;  %v1404_v44 = vld [vmem:[%s1643_s0 + $0x24] ss:$16 sps:$4 sm:$0xff]   ;;  %v84_v50 = vrot.slane %v1403_v43, %v1543_v37  ;;  %v1412_v7 = vld [vmem:[#allocation2 + $0x1c8] sm:$0xff]  }
  0x20   :  { %v1399_v40 = vld [vmem:[%s1643_s0 + $0x40] ss:$16 sps:$4 sm:$0xff]   ;;  %v1405_v45 = vld [vmem:[%s1643_s0 + $0x44] ss:$16 sps:$4 sm:$0xff]   ;;  %v91_v46 = vrot.slane %v1397_v39, %v1543_v37  ;;  %v98_v51 = vrot.slane %v1404_v44, %v1543_v37  ;;  %v1413_v8 = vld [vmem:[#allocation2 + $0x108] sm:$0xff]  }
  0x21   :  { %1246 = vmatpush3.bf16.msra.mxu0 %v1377_v14  ;;  %v1401_v41 = vld [vmem:[%s1643_s0 + $0x60] ss:$16 sps:$4 sm:$0xff]   ;;  %v149_v47 = vrot.slane %v1399_v40, %v1543_v37  ;;  %v1406_v49 = vld [vmem:[%s1643_s0 + $0x64] ss:$16 sps:$4 sm:$0xff]   ;;  %v156_v52 = vrot.slane %v1405_v45, %v1543_v37  ;;  %v1414_v9 = vld [vmem:[#allocation2 + $0x188] sm:$0xff]  }
  0x22   :  { %1268 = vmatpush3.bf16.msra.mxu1 %v1378_v15  ;;  %1247 = vmatprep.subr.bf16.mxu0 %v1379_v16  ;;  %v163_v48 = vrot.slane %v1401_v41, %v1543_v37  ;;  %v100_v54 = vcombine.high %v77_v42, %v91_v46  ;;  %v170_v56 = vrot.slane %v1406_v49, %v1543_v37  ;;  %v1410_v2 = vld [vmem:[#allocation2 + $0x180] sm:$0xff]   ;;  %v1415_v10 = vld [vmem:[#allocation2 + $0x150] sm:$0xff]   ;;  %v1419_v14 = vld [vmem:[#allocation2 + $0x158] sm:$0xff]  }
  0x23   :  { %1269 = vmatprep.subr.bf16.mxu1 %v1380_v17  ;;  %v99_v57 = vcombine.low %v77_v42, %v91_v46  ;;  %v102_v59 = vcombine.high %v84_v50, %v98_v51  ;;  %v101_v61 = vcombine.low %v84_v50, %v98_v51  ;;  %v1416_v11 = vld [vmem:[#allocation2 + $0x1d0] sm:$0xff]   ;;  %v1420_v15 = vld [vmem:[#allocation2 + $0x1d8] sm:$0xff]   ;;  %v1430_v25 = vld [vmem:[#allocation2 + $0x1a8] sm:$0xff]  }
  0x24   :  { %v172_v55 = vcombine.high %v149_v47, %v163_v48  ;;  %v171_v60 = vcombine.low %v149_v47, %v163_v48  ;;  %v174_v0 = vcombine.high %v156_v52, %v170_v56  ;;  %v173_v1 = vcombine.low %v156_v52, %v170_v56  ;;  %v1417_v12 = vld [vmem:[#allocation2 + $0x110] sm:$0xff]   ;;  %v1421_v16 = vld [vmem:[#allocation2 + $0x118] sm:$0xff]  }
  0x25   :  { %1248 = vmatpush3.bf16.msra.mxu0 %v1381_v18  ;;  %v1418_v13 = vld [vmem:[#allocation2 + $0x190] sm:$0xff]   ;;  %v1422_v17 = vld [vmem:[#allocation2 + $0x198] sm:$0xff]   ;;  %v1423_v18 = vld [vmem:[#allocation2 + $0x160] sm:$0xff]  }
  0x26   :  { %1270 = vmatpush3.bf16.msra.mxu1 %v1382_v19  ;;  %1249 = vmatprep.subr.bf16.mxu0 %v1383_v20  ;;  %v228_v63 = vpack.c.bf16 %v172_v55, %v100_v54  ;;  %v227_v3 = vpack.c.bf16 %v171_v60, %v99_v57  ;;  %v230_v5 = vpack.c.bf16 %v174_v0, %v102_v59  ;;  %v1424_v19 = vld [vmem:[#allocation2 + $0x1e0] sm:$0xff]   ;;  %v1431_v26 = vld [vmem:[#allocation2 + $0x170] sm:$0xff]   ;;  %v1437_v32 = vld [vmem:[#allocation2 + $0x138] sm:$0xff]  }
  0x27   :  { %1271 = vmatprep.subr.bf16.mxu1 %v1384_v21  ;;  %v229_v6 = vpack.c.bf16 %v173_v1, %v101_v61  ;;  %v1425_v20 = vld [vmem:[#allocation2 + $0x120] sm:$0xff]   ;;  %v1432_v27 = vld [vmem:[#allocation2 + $0x1f0] sm:$0xff]   ;;  %v1443_v38 = vld [vmem:[%s1643_s0 + $0x48] ss:$16 sps:$4 sm:$0xff]  }
  0x28   :  { %786 = vmatprep.mubr.bf16.mxu0 %v228_v63  ;;  %827 = vmatprep.mubr.bf16.mxu1 %v230_v5  ;;  %v1426_v21 = vld [vmem:[#allocation2 + $0x1a0] sm:$0xff]   ;;  %v1445_v39 = vld [vmem:[%s1643_s0 + $0x68] ss:$16 sps:$4 sm:$0xff]   ;;  %v1447_v40 = vld [vmem:[%s1643_s0 + $0xc] ss:$16 sps:$4 sm:$0xff]   ;;  %v185_v44 = vrot.slane %v1443_v38, %v1543_v37 }
  0x29   :  { %1250 = vmatpush3.bf16.msra.mxu0 %v1385_v22  ;;  %v1427_v22 = vld [vmem:[#allocation2 + $0x168] sm:$0xff]   ;;  %v199_v47 = vrot.slane %v1445_v39, %v1543_v37  ;;  %v120_v48 = vrot.slane %v1447_v40, %v1543_v37  ;;  %v1451_v0 = vld [vmem:[%s1646_s3] sm:$0xff]  }
  0x2a   :  { %1272 = vmatpush3.bf16.msra.mxu1 %v1386_v23  ;;  %1251 = vmatprep.subr.bf16.mxu0 %v1387_v24  ;;  %v1428_v23 = vld [vmem:[#allocation2 + $0x1e8] sm:$0xff]  }
  0x2b   :  { %1273 = vmatprep.subr.bf16.mxu1 %v1388_v28  ;;  %v1429_v24 = vld [vmem:[#allocation2 + $0x128] sm:$0xff]   ;;  %v1433_v28 = vld [vmem:[#allocation2 + $0x130] sm:$0xff]   ;;  %v208_v54 = vcombine.high %v185_v44, %v199_v47  ;;  %v207_v56 = vcombine.low %v185_v44, %v199_v47 }
  0x2c   :  { %v1448_v41 = vld [vmem:[%s1643_s0 + $0x2c] ss:$16 sps:$4 sm:$0xff]  }
  0x2d   :  { %1252 = vmatpush3.bf16.msra.mxu0 %v1389_v29  ;;  %v1434_v29 = vld [vmem:[#allocation2 + $0x1b0] sm:$0xff]   ;;  %v1449_v45 = vld [vmem:[%s1643_s0 + $0x4c] ss:$16 sps:$4 sm:$0xff]   ;;  %v134_v49 = vrot.slane %v1448_v41, %v1543_v37 }
  0x2e   :  { %1274 = vmatpush3.bf16.msra.mxu1 %v1390_v30  ;;  %1253 = vmatprep.subr.bf16.mxu0 %v1391_v31  ;;  %v1435_v30 = vld [vmem:[#allocation2 + $0x178] sm:$0xff]   ;;  %v192_v51 = vrot.slane %v1449_v45, %v1543_v37  ;;  %v1452_v1 = vld [vmem:[%s1646_s3 + $0x8] sm:$0xff]  }
  0x2f   :  { %1275 = vmatprep.subr.bf16.mxu1 %v1392_v34  ;;  %v1436_v31 = vld [vmem:[#allocation2 + $0x1f8] sm:$0xff]   ;;  %v138_v55 = vcombine.high %v120_v48, %v134_v49  ;;  %v137_v57 = vcombine.low %v120_v48, %v134_v49  ;;  %v1456_v5 = vld [vmem:[%s1646_s3 + $0x28] sm:$0xff]  }
  0x30   :  { %v1438_v34 = vld [vmem:[#allocation2 + $0x1b8] sm:$0xff]  }
  0x31   :  { %1254 = vmatpush3.bf16.msra.mxu0 %v1393_v35  ;;  %v1439_v35 = vld [vmem:[%s1643_s0 + $0x8] ss:$16 sps:$4 sm:$0xff]   ;;  %v1450_v46 = vld [vmem:[%s1643_s0 + $0x6c] ss:$16 sps:$4 sm:$0xff]  }
  0x32   :  { %1276 = vmatpush3.bf16.msra.mxu1 %v1394_v36  ;;  %1283 = vmatprep.subr.bf16.mxu0 %v1407_v53  ;;  %v1441_v36 = vld [vmem:[%s1643_s0 + $0x28] ss:$16 sps:$4 sm:$0xff]   ;;  %v113_v42 = vrot.slane %v1439_v35, %v1543_v37  ;;  %v206_v52 = vrot.slane %v1450_v46, %v1543_v37  ;;  %v1225_v46 = vld [vmem:[%s1647_s4] ss:$0 sm:$0xff] }
  0x33   :  { %1305 = vmatprep.subr.bf16.mxu1 %v1408_v58  ;;  %v127_v43 = vrot.slane %v1441_v36, %v1543_v37  ;;  %v1495_v37 = vmov 0.0  }
  0x34   :  { %787 = vmatmul.mubr.bf16.vlgmr.msra.gmra.mrb[0].mxu0 %v227_v3  ;;  %v210_v58 = vcombine.high %v192_v51, %v206_v52  ;;  %v209_v59 = vcombine.low %v192_v51, %v206_v52  ;;  %v1454_v3 = vld [vmem:[%s1646_s3 + $0x18] sm:$0xff]  }
  0x35   :  { %1284 = vmatpush3.bf16.msra.mxu0 %v1409_v62  ;;  %828 = vmatmul.mubr.bf16.vlgmr.msra.gmra.mrb[0].mxu1 %v229_v6  ;;  %v136_v50 = vcombine.high %v113_v42, %v127_v43  ;;  %v135_v53 = vcombine.low %v113_v42, %v127_v43  ;;  %v1457_v6 = vld [vmem:[%s1646_s3 + $0x30] sm:$0xff]  }
  0x36   :  { %1285 = vmatprep.subr.bf16.mxu0 %v1411_v4  ;;  %1306 = vmatpush3.bf16.msra.mxu1 %v1410_v2  ;;  %v234_v62 = vpack.c.bf16 %v210_v58, %v138_v55  ;;  %v233_v63 = vpack.c.bf16 %v209_v59, %v137_v57  ;;  %v1453_v2 = vld [vmem:[%s1646_s3 + $0x10] sm:$0xff]   ;;  %v1455_v4 = vld [vmem:[%s1646_s3 + $0x20] sm:$0xff]  }
  0x37   :  { %1307 = vmatprep.subr.bf16.mxu1 %v1412_v7  ;;  %v232_v60 = vpack.c.bf16 %v208_v54, %v136_v50  ;;  %v231_v61 = vpack.c.bf16 %v207_v56, %v135_v53  ;;  %v1458_v7 = vld [vmem:[%s1646_s3 + $0x38] sm:$0xff]  }
  0x38   :  { %909 = vmatprep.mubr.bf16.mxu1 %v234_v62 }
  0x39   :  { %1286 = vmatpush3.bf16.msra.mxu0 %v1413_v8  ;;  %868 = vmatprep.mubr.bf16.mxu0 %v232_v60 }
  0x3a   :  { %1287 = vmatprep.subr.bf16.mxu0 %v1415_v10  ;;  %1308 = vmatpush3.bf16.msra.mxu1 %v1414_v9  ;;  %v1160_v9 = vld [vmem:[%s1645_s2] ss:$0 sm:$0xff] }
  0x3b   :  { %1309 = vmatprep.subr.bf16.mxu1 %v1416_v11 }
  0x3d   :  { %1288 = vmatpush3.bf16.msra.mxu0 %v1417_v12 }
  0x3e   :  { %1289 = vmatprep.subr.bf16.mxu0 %v1419_v14  ;;  %1310 = vmatpush3.bf16.msra.mxu1 %v1418_v13 }
  0x3f   :  { %1311 = vmatprep.subr.bf16.mxu1 %v1420_v15 }
  0x41   :  { %1290 = vmatpush3.bf16.msra.mxu0 %v1421_v16 }
  0x42   :  { %1291 = vmatprep.subr.bf16.mxu0 %v1423_v18  ;;  %1312 = vmatpush3.bf16.msra.mxu1 %v1422_v17 }
  0x43   :  { %1313 = vmatprep.subr.bf16.mxu1 %v1424_v19 }
  0x45   :  { %1292 = vmatpush3.bf16.msra.mxu0 %v1425_v20 }
  0x46   :  { %1293 = vmatprep.subr.bf16.mxu0 %v1427_v22  ;;  %1314 = vmatpush3.bf16.msra.mxu1 %v1426_v21 }
  0x47   :  { %1315 = vmatprep.subr.bf16.mxu1 %v1428_v23 }
  0x49   :  { %1294 = vmatpush3.bf16.msra.mxu0 %v1429_v24 }
  0x4a   :  { %1295 = vmatprep.subr.bf16.mxu0 %v1431_v26  ;;  %1316 = vmatpush3.bf16.msra.mxu1 %v1430_v25 }
  0x4b   :  { %1317 = vmatprep.subr.bf16.mxu1 %v1432_v27 }
  0x4d   :  { %1296 = vmatpush3.bf16.msra.mxu0 %v1433_v28 }
  0x4e   :  { %1297 = vmatprep.subr.bf16.mxu0 %v1435_v30  ;;  %1318 = vmatpush3.bf16.msra.mxu1 %v1434_v29 }
  0x4f   :  { %1319 = vmatprep.subr.bf16.mxu1 %v1436_v31 }
  0x51   :  { %1298 = vmatpush3.bf16.msra.mxu0 %v1437_v32 }
  0x52   :  { %1320 = vmatpush3.bf16.msra.mxu1 %v1438_v34  ;;  %1336 = vmatprep.subr.bf16.mxu0 %v1495_v37 }
  0x54   :  { %869 = vmatmul.mubr.bf16.vlgmr.msra.gmra.mrb[4].mxu0 %v231_v61 }
  0x55   :  { %910 = vmatmul.mubr.bf16.vlgmr.msra.gmra.mrb[4].mxu1 %v233_v63  ;;  %1337 = vmatpush3.bf16.msra.mxu0 %v1451_v0  ;;  %v1497_v63 = vmov 1966171168  }
  0x56   :  { %1338 = vmatprep.subr.bf16.mxu0 %v1495_v37  ;;  %1352 = vmatprep.mubr.msk.bf16.mxu0 %vm1496_vm0, %v1495_v37  ;;  %v1057_v0 = vunpack.c.l.s4 %v1497_v63 }
  0x59   :  { %1339 = vmatpush3.bf16.msra.mxu0 %v1452_v1 }
  0x5a   :  { %1340 = vmatprep.subr.bf16.mxu0 %v1495_v37 }
  0x5d   :  { %1341 = vmatpush3.bf16.msra.mxu0 %v1453_v2  ;;  %v1058_v2 = vunpack.c.0.s8 %v1057_v0 }
  0x5e   :  { %1342 = vmatprep.subr.bf16.mxu0 %v1495_v37 }
  0x61   :  { %1343 = vmatpush3.bf16.msra.mxu0 %v1454_v3 }
  0x62   :  { %1344 = vmatprep.subr.bf16.mxu0 %v1495_v37 }
  0x65   :  { %1345 = vmatpush3.bf16.msra.mxu0 %v1455_v4 }
  0x66   :  { %1346 = vmatprep.subr.bf16.mxu0 %v1495_v37 }
  0x69   :  { %1347 = vmatpush3.bf16.msra.mxu0 %v1456_v5 }
  0x6a   :  { %1348 = vmatprep.subr.bf16.mxu0 %v1495_v37 }
  0x6d   :  { %1349 = vmatpush3.bf16.msra.mxu0 %v1457_v6  ;;  %v1061_v6 = vsub.s32 %v1058_v2, %v1540_v33 }
  0x6e   :  { %1350 = vmatprep.subr.bf16.mxu0 %v1495_v37 }
  0x71   :  { %1351 = vmatpush3.bf16.msra.mxu0 %v1458_v7 }
 0x107   :  { %v1255_v8 = vpop.f32.mrb[0].mxu0 }
 0x108   :  { %v1256_v10 = vpop.f32.mrb[1].mxu0  ;;  %v1277_v11 = vpop.f32.mrb[0].mxu1 }
 0x109   :  { %v1257_v12 = vadd.f32 %v1256_v10, %v1255_v8  ;;  %v1258_v13 = vpop.f32.mrb[2].mxu0  ;;  %v1278_v14 = vpop.f32.mrb[1].mxu1 }
 0x10a   :  { %v1259_v15 = vpop.f32.mrb[3].mxu0  ;;  %v1279_v17 = vadd.f32 %v1278_v14, %v1277_v11  ;;  %v1280_v18 = vpop.f32.mrb[2].mxu1 }
 0x10b   :  { %v789_v16 = vadd.f32 %v1257_v12, %v1160_v9  ;;  %v1260_v19 = vadd.f32 %v1259_v15, %v1258_v13  ;;  %v1281_v20 = vpop.f32.mrb[3].mxu1 }
 0x10c   :  { %v1282_v23 = vadd.f32 %v1281_v20, %v1280_v18 }
 0x10d   :  { %v830_v21 = vadd.f32 %v1279_v17, %v789_v16  ;;  %v792_v22 = vadd.f32 %v1260_v19, %v1160_v9 }
 0x10f   :  { %v833_v24 = vadd.f32 %v1282_v23, %v792_v22 }
 0x127   :  { %v1299_v25 = vpop.f32.mrb[4].mxu0 }
 0x128   :  { %v1321_v26 = vpop.f32.mrb[4].mxu1  ;;  %v1300_v27 = vpop.f32.mrb[5].mxu0 }
 0x129   :  { %v1301_v28 = vadd.f32 %v1300_v27, %v1299_v25  ;;  %v1322_v29 = vpop.f32.mrb[5].mxu1  ;;  %v1302_v30 = vpop.f32.mrb[6].mxu0 }
 0x12a   :  { %v1323_v31 = vadd.f32 %v1322_v29, %v1321_v26  ;;  %v1324_v32 = vpop.f32.mrb[6].mxu1  ;;  %v1303_v34 = vpop.f32.mrb[7].mxu0 }
 0x12b   :  { %v871_v35 = vadd.f32 %v1301_v28, %v830_v21  ;;  %v1304_v36 = vadd.f32 %v1303_v34, %v1302_v30  ;;  %v1325_v38 = vpop.f32.mrb[7].mxu1 }
 0x12c   :  { %v1326_v39 = vadd.f32 %v1325_v38, %v1324_v32 }
 0x12d   :  { %v912_v40 = vadd.f32 %v1323_v31, %v871_v35  ;;  %v874_v41 = vadd.f32 %v1304_v36, %v833_v24 }
 0x12f   :  { %v915_v42 = vadd.f32 %v1326_v39, %v874_v41  ;;  %v918_v43 = vmax.f32 %v912_v40, 0.0 }
 0x131   :  { %v919_v44 = vmax.f32 %v915_v42, 0.0 }
 0x133   :  { %v920_v45 = vpack.c.bf16 %v919_v44, %v918_v43 }
 0x135   :  { %1353 = vmatmul.mubr.bf16.vlgmr.msra.gmra.mrb[8].mxu0 %v920_v45 }
 0x208   :  { %v1026_v47 = vpop.f32.mrb[8].mxu0 }
 0x209   :  { %v1027_v48 = vadd.f32 %v1225_v46, %v1026_v47  ;;  %v1354_v49 = vpop.f32.mrb[9].mxu0 }
 0x20a   :  { %v1029_v50 = vpop.f32.mrb[10].mxu0 }
 0x20b   :  { %1033 = vmax.xlane.f32.xlu0 %v1027_v48  ;;  %v1355_v51 = vpop.f32.mrb[11].mxu0  ;;  %v1030_v52 = vadd.f32 %v1225_v46, %v1029_v50 }
 0x20f   :  { %1035 = vmax.xlane.f32.xlu0 %v1030_v52 }
 0x298   :  { %v1034_v53 = vpop.xlane.xlu0 %1033 }
 0x299   :  { %v1037_v54 = vsub.f32 %v1027_v48, %v1034_v53 }
 0x29b   :  { %v1039_v55 = vmul.f32 1.442695, %v1037_v54 }
 0x29c   :  { %v1036_v56 = vpop.xlane.xlu0 %1035 }
 0x29d   :  { %v1038_v57 = vsub.f32 %v1030_v52, %v1036_v56  ;;  %1459 = vpow2.f32 %v1039_v55 }
 0x29f   :  { %v1041_v58 = vmul.f32 1.442695, %v1038_v57 }
 0x2a1   :  { %1461 = vpow2.f32 %v1041_v58 }
 0x2a7   :  { %v1460_v59 = vpop.eup %1459 }
 0x2a8   :  { %1043 = vadd.xlane.f32.xlu1 %v1460_v59 }
 0x2ab   :  { %v1462_v60 = vpop.eup %1461 }
 0x2ac   :  { %1045 = vadd.xlane.f32.xlu1 %v1462_v60 }
 0x335   :  { %v1044_v61 = vpop.xlane.xlu1 %1043 }
 0x336   :  { %1463 = vlog2.f32 %v1044_v61 }
 0x339   :  { %v1046_v62 = vpop.xlane.xlu1 %1045 }
 0x33a   :  { %1465 = vlog2.f32 %v1046_v62 }
 0x340   :  { %v1464_v37 = vpop.eup %1463 }
 0x341   :  { %v1048_v1 = vmul.f32 0.6931472, %v1464_v37 }
 0x343   :  { %v1051_v5 = vsub.f32 %v1037_v54, %v1048_v1 }
 0x344   :  { %v1466_v3 = vpop.eup %1465 }
 0x345   :  { %v1050_v4 = vmul.f32 0.6931472, %v1466_v3 }
 0x347   :  { %v1052_v7 = vsub.f32 %v1038_v57, %v1050_v4 }
 0x349   :  { %v1053_v8 = vpack.c.bf16 %v1052_v7, %v1051_v5 }
 0x34b   :  { %v1062_v9 = vrot.slane %v1053_v8, %v1061_v6 }
 0x34d   :  { %1235 = vst.sshfl [vmem:[#allocation4] sm:$0x1 pattern:$0x73625140] %v1062_v9 }
 0x354   :  { %v1137_v10 = vld [vmem:[#allocation4] sm:$0x1] }
 0x355   :  { %1138 = vst [vmem:[%s1648_s5] sm:$0x1] %v1137_v10 }
 0x356   :  { %1155 = vsyncpa [#allocation3], 1 }

</bundles_post_ra>
